<compile_context>
chip_gen: v5e
topology: v5e:2x2
jax: 0.10.0
libtpu: 0.0.40
codegen_flags: <defaults>
</compile_context>

<pallas_src>
import math

import jax
import jax.numpy as jnp
from jax.experimental import pallas as pl
from jax.experimental.pallas import tpu as pltpu


def _make_conv1x1_kernel(kt, has_bias, use_scratch, compute_dtype, precision):
    """Build the kernel body for a static configuration.

    Ref order: x_ref, w_ref, [b_ref], o_ref, [acc_ref]
      x_ref  : (1, tk, ts)     activation block (lane axis = flattened spatial)
      w_ref  : (C_out, tk)     weight block (already in compute dtype)
      b_ref  : (C_out, 1)      f32 bias (only when has_bias)
      o_ref  : (1, C_out, ts)  output block (lane-dense along spatial)
      acc_ref: (C_out, ts)     f32 scratch (only when use_scratch)
    """

    def kernel(*refs):
        i = 0
        x_ref = refs[i]; i += 1
        w_ref = refs[i]; i += 1
        b_ref = None
        if has_bias:
            b_ref = refs[i]; i += 1
        o_ref = refs[i]; i += 1
        acc_ref = refs[i] if use_scratch else None

        xb = x_ref[0]
        if compute_dtype is not None and xb.dtype != compute_dtype:
            # In-kernel cast: MXU gets bf16 inputs without an extra HBM pass.
            xb = xb.astype(compute_dtype)

        part = jnp.dot(w_ref[...], xb,
                       preferred_element_type=jnp.float32,
                       precision=precision)

        if kt == 1:
            # Single K step -> write straight to the output block.
            if has_bias:
                part = part + b_ref[...]
            o_ref[0] = part.astype(o_ref.dtype)
            return

        k = pl.program_id(2)

        if use_scratch:
            # Low-precision output: accumulate in an f32 scratch buffer.
            @pl.when(k == 0)
            def _init():
                acc_ref[...] = (part + b_ref[...]) if has_bias else part

            @pl.when(k > 0)
            def _accum():
                acc_ref[...] += part

            @pl.when(k == pl.num_programs(2) - 1)
            def _finalize():
                o_ref[0] = acc_ref[...].astype(o_ref.dtype)
        else:
            # f32 output: the output block itself is the accumulator (it stays
            # resident in VMEM across the innermost "arbitrary" k axis).
            @pl.when(k == 0)
            def _init():
                o_ref[0] = (part + b_ref[...]) if has_bias else part

            @pl.when(k > 0)
            def _accum():
                o_ref[0] += part

    return kernel


def _vmem_capacity_bytes():
    try:
        return int(pltpu.get_tpu_info().vmem_capacity_bytes)
    except Exception:
        return 64 << 20          # conservative default (v7x-sized VMEM)


def _pick_k_tile(c_in):
    """K (reduction) tile aligned to the 256-wide MXU on v6e/v7x."""
    if c_in <= 512:
        return c_in
    if c_in % 512 == 0:
        return 512
    if c_in % 256 == 0:
        return 256
    # Ragged large C_in: single K block (weight block last dim must be a
    # multiple of 128 or the full axis).
    return c_in


def _pick_spatial_tile(s_pad, n, tk, c_out, x_isz, w_isz, o_isz,
                       need_acc, budget):
    """Largest lane-dense spatial tile dividing s_pad that fits the budget."""
    cands = [c for c in (8192, 4096, 2048, 1024, 512, 256, 128)
             if c <= s_pad and s_pad % c == 0]
    if not cands:
        cands = [s_pad]
    ts = cands[-1]
    for cand in cands:
        need = (2 * tk * cand * x_isz          # double-buffered activation
                + 2 * c_out * cand * o_isz     # double-buffered output
                + 2 * c_out * tk * w_isz       # double-buffered weight
                + 2 * c_out * 4)               # bias
        if need_acc:
            need += c_out * cand * 4           # f32 accumulator scratch
        if need <= budget:
            ts = cand
            break
    # Keep >= 2 parallel programs so both v7x TensorCores get work
    # (no-op on single-TC v5e/v6e).
    while n * (s_pad // ts) < 2:
        smaller = [c for c in cands if c < ts]
        if not smaller:
            break
        ts = smaller[0]
    # TODO(synk): when N==1 and S_pad==128, split over C_out as an extra
    # parallel grid axis to still feed both v7x TensorCores.
    return ts


def pallas_linear_1x1conv(x_nchw, weight, bias=None, *,
                          compute_dtype=None, out_dtype=None, precision=None):
    """torch.nn.Conv2d(c_in, c_out, kernel_size=1)(x) as a Pallas TPU kernel.

    x_nchw : (N, C_in, H, W)
    weight : (C_out, C_in)   -- the (C_out, C_in, 1, 1) conv weight squeezed
    bias   : (C_out,) or None
    compute_dtype : optional MXU input dtype (jnp.bfloat16 is the native MXU
        dtype on v5e/v6e/v7x); accumulation and bias-add stay f32 and the
        bf16 cast happens inside the kernel (no extra HBM pass).
    out_dtype : output dtype (defaults to x's dtype).
    precision : optional lax.Precision forwarded to the in-kernel dot.
    Returns (N, C_out, H, W).
    """
    N, C_in, H, W = x_nchw.shape
    C_out = weight.shape[0]
    S = H * W

    out_dtype = jnp.dtype(out_dtype or x_nchw.dtype)
    cdt = jnp.dtype(compute_dtype) if compute_dtype is not None else None
    w_dtype = cdt if cdt is not None else jnp.dtype(weight.dtype)

    # Pure reshape in NCHW (no transpose). Lane-pad ragged spatial extents up
    # to a multiple of 128 so every tile gets unmasked, lane-dense stores.
    x3 = x_nchw.reshape(N, C_in, S)
    S_pad = ((S + 127) // 128) * 128
    if S_pad != S:
        x3 = jnp.pad(x3, ((0, 0), (0, 0), (0, S_pad - S)))

    w = weight if cdt is None else weight.astype(cdt)       # (C_out, C_in)
    has_bias = bias is not None
    if has_bias:
        b2 = bias.reshape(C_out, 1).astype(jnp.float32)

    tk = _pick_k_tile(C_in)
    kt = C_in // tk
    use_scratch = (kt > 1) and (out_dtype != jnp.float32)

    # Generation-aware working-set budget + vmem limit.
    vmem_cap = _vmem_capacity_bytes()
    if vmem_cap >= (100 << 20):          # v5e / v6e: 128 MiB physical VMEM
        budget, limit_cap = 40 << 20, 96 << 20
    else:                                # v7x: 64 MiB physical VMEM
        budget, limit_cap = 24 << 20, 48 << 20

    x_isz = jnp.dtype(x3.dtype).itemsize
    w_isz = jnp.dtype(w_dtype).itemsize
    o_isz = out_dtype.itemsize
    ts = _pick_spatial_tile(S_pad, N, tk, C_out, x_isz, w_isz, o_isz,
                            use_scratch, budget)

    vmem_need = (2 * tk * ts * x_isz
                 + 2 * C_out * ts * o_isz
                 + 2 * C_out * tk * w_isz
                 + 2 * C_out * 4
                 + (C_out * ts * 4 if use_scratch else 0))
    vmem_limit = int(min(max(2 * vmem_need, 16 << 20), limit_cap))

    kernel = _make_conv1x1_kernel(kt, has_bias, use_scratch, cdt, precision)

    in_specs = [
        pl.BlockSpec((1, tk, ts), lambda n, s, k: (n, k, s)),
        pl.BlockSpec((C_out, tk), lambda n, s, k: (0, k)),
    ]
    inputs = [x3, w]
    if has_bias:
        in_specs.append(pl.BlockSpec((C_out, 1), lambda n, s, k: (0, 0)))
        inputs.append(b2)

    scratch_shapes = ([pltpu.VMEM((C_out, ts), jnp.float32)]
                      if use_scratch else [])

    # TODO(synk): sweep pl.Buffered(3) on the x spec for kt==1 shapes once the
    # per-chip VMEM headroom check confirms a third buffer fits.
    out3 = pl.pallas_call(
        kernel,
        out_shape=jax.ShapeDtypeStruct((N, C_out, S_pad), out_dtype),
        grid_spec=pltpu.PrefetchScalarGridSpec(
            num_scalar_prefetch=0,
            grid=(N, S_pad // ts, kt),
            in_specs=in_specs,
            out_specs=pl.BlockSpec((1, C_out, ts), lambda n, s, k: (n, 0, s)),
            scratch_shapes=scratch_shapes,
        ),
        compiler_params=pltpu.CompilerParams(
            dimension_semantics=("parallel", "parallel", "arbitrary"),
            vmem_limit_bytes=vmem_limit,
        ),
    )(*inputs)

    if S_pad != S:
        out3 = out3[:, :, :S]
    return out3.reshape(N, C_out, H, W)


if __name__ == "__main__":
    key = jax.random.PRNGKey(0)
    keys = jax.random.split(key, 8)

    # --- small shape consistent with the module: kt == 1 fast path ---------
    N, C_in, H, W = 2, 4, 16, 16
    C_out = 8

    x = jax.random.normal(keys[0], (N, C_in, H, W), dtype=jnp.float32)
    bound = 1.0 / math.sqrt(C_in)
    weight = jax.random.uniform(keys[1], (C_out, C_in), minval=-bound,
                                maxval=bound, dtype=jnp.float32)
    bias = jax.random.uniform(keys[2], (C_out,), minval=-bound, maxval=bound,
                              dtype=jnp.float32)

    ref = jnp.einsum("nchw,oc->nohw", x, weight) + bias[None, :, None, None]

    y = jax.block_until_ready(pallas_linear_1x1conv(x, weight, bias))
    assert y.shape == (N, C_out, H, W)
    assert jnp.allclose(y, ref, atol=5e-2, rtol=5e-2)

    # bf16 compute path (in-kernel cast; valid on v5e/v6e/v7x)
    y_bf16 = jax.block_until_ready(
        pallas_linear_1x1conv(x, weight, bias, compute_dtype=jnp.bfloat16))
    assert y_bf16.shape == (N, C_out, H, W)
    assert jnp.allclose(y_bf16, ref, atol=1.5e-1, rtol=5e-2)

    # no-bias path (bias input and bias add skipped entirely)
    ref_nb = jnp.einsum("nchw,oc->nohw", x, weight)
    y_nb = jax.block_until_ready(pallas_linear_1x1conv(x, weight, None))
    assert jnp.allclose(y_nb, ref_nb, atol=5e-2, rtol=5e-2)

    # ragged spatial extent (S % 128 != 0 -> lane-padding path)
    Hr, Wr = 9, 11
    xr = jax.random.normal(keys[3], (1, C_in, Hr, Wr), dtype=jnp.float32)
    refr = jnp.einsum("nchw,oc->nohw", xr, weight) + bias[None, :, None, None]
    yr = jax.block_until_ready(pallas_linear_1x1conv(xr, weight, bias))
    assert yr.shape == (1, C_out, Hr, Wr)
    assert jnp.allclose(yr, refr, atol=5e-2, rtol=5e-2)

    # kt > 1 paths (K tiling): f32 output accumulates in-place in o_ref;
    # bf16 output uses the f32 scratch accumulator.
    C_in2, C_out2 = 1024, 16
    x2 = jax.random.normal(keys[4], (1, C_in2, 16, 16), dtype=jnp.float32)
    bound2 = 1.0 / math.sqrt(C_in2)
    w2 = jax.random.uniform(keys[5], (C_out2, C_in2), minval=-bound2,
                            maxval=bound2, dtype=jnp.float32)
    b2v = jax.random.uniform(keys[6], (C_out2,), minval=-bound2, maxval=bound2,
                             dtype=jnp.float32)
    ref2 = jnp.einsum("nchw,oc->nohw", x2, w2) + b2v[None, :, None, None]

    y2 = jax.block_until_ready(pallas_linear_1x1conv(x2, w2, b2v))
    assert y2.shape == (1, C_out2, 16, 16)
    assert jnp.allclose(y2, ref2, atol=5e-2, rtol=5e-2)

    y2_bf16 = jax.block_until_ready(
        pallas_linear_1x1conv(x2, w2, b2v, out_dtype=jnp.bfloat16))
    assert jnp.allclose(y2_bf16.astype(jnp.float32), ref2,
                        atol=1.5e-1, rtol=5e-2)

    print("KERNEL_OK")
</pallas_src>

<mosaic_0001>
module attributes {stable_mosaic.version = 11 : i64} {
  func.func @kernel(%arg0: i32, %arg1: i32, %arg2: i32, %arg3: memref<1x4x256xf32, #tpu.memory_space<vmem>>, %arg4: memref<8x4xf32, #tpu.memory_space<vmem>>, %arg5: memref<8x1xf32, #tpu.memory_space<vmem>>, %arg6: memref<1x8x256xf32, #tpu.memory_space<vmem>>) attributes {dimension_semantics = [#tpu.dimension_semantics<parallel>, #tpu.dimension_semantics<parallel>, #tpu.dimension_semantics<arbitrary>], iteration_bounds = array<i64: 2, 1, 1>, scalar_prefetch = 0 : i64, scratch_operands = 0 : i64, tpu.core_type = #tpu.core_type<tc>, window_params = [{transform_indices = @transform_0, window_bounds = array<i64: 1, 4, 256>}, {transform_indices = @transform_1, window_bounds = array<i64: 8, 4>}, {pipeline_mode = #tpu.pipeline_mode<synchronous>, transform_indices = @transform_2, window_bounds = array<i64: 8, 1>}, {transform_indices = @transform_3, window_bounds = array<i64: 1, 8, 256>}]} {
    %c0 = arith.constant 0 : index
    %c0_0 = arith.constant 0 : index
    %c0_1 = arith.constant 0 : index
    %0 = vector.load %arg3[%c0, %c0_0, %c0_1] : memref<1x4x256xf32, #tpu.memory_space<vmem>>, vector<1x4x256xf32>
    %1 = vector.shape_cast %0 : vector<1x4x256xf32> to vector<4x256xf32>
    %c0_2 = arith.constant 0 : index
    %c0_3 = arith.constant 0 : index
    %2 = vector.load %arg4[%c0_2, %c0_3] : memref<8x4xf32, #tpu.memory_space<vmem>>, vector<8x4xf32>
    %cst = arith.constant dense<0.000000e+00> : vector<8x256xf32>
    %3 = tpu.matmul %2, %1, %cst {dimension_numbers = #tpu.dot_dimension_numbers<[1], [0], [0], [1], [0, 0, 1, 1], [], []>} : vector<8x4xf32>, vector<4x256xf32>, vector<8x256xf32> -> vector<8x256xf32>
    %c0_4 = arith.constant 0 : index
    %c0_5 = arith.constant 0 : index
    %4 = vector.load %arg5[%c0_4, %c0_5] : memref<8x1xf32, #tpu.memory_space<vmem>>, vector<8x1xf32>
    %5 = vector.broadcast %4 : vector<8x1xf32> to vector<8x256xf32>
    %6 = arith.addf %3, %5 : vector<8x256xf32>
    %c0_6 = arith.constant 0 : index
    %c0_7 = arith.constant 0 : index
    %c0_8 = arith.constant 0 : index
    %7 = vector.load %arg6[%c0_6, %c0_7, %c0_8] : memref<1x8x256xf32, #tpu.memory_space<vmem>>, vector<1x8x256xf32>
    %8 = vector.shape_cast %7 : vector<1x8x256xf32> to vector<8x256xf32>
    %9 = vector.shape_cast %6 : vector<8x256xf32> to vector<1x8x256xf32>
    tpu.vector_store %arg6[%c0_6, %c0_7, %c0_8], %9 {strides = array<i32>} : memref<1x8x256xf32, #tpu.memory_space<vmem>>, vector<1x8x256xf32>,
    return
  }
  func.func @transform_0(%arg0: i32, %arg1: i32, %arg2: i32) -> (i32, i32, i32) {
    %c0_i32 = arith.constant 0 : i32
    return %arg0, %arg2, %arg1 : i32, i32, i32
  }
  func.func @transform_1(%arg0: i32, %arg1: i32, %arg2: i32) -> (i32, i32) {
    %c0_i32 = arith.constant 0 : i32
    %c0_i32_0 = arith.constant 0 : i32
    return %c0_i32, %arg2 : i32, i32
  }
  func.func @transform_2(%arg0: i32, %arg1: i32, %arg2: i32) -> (i32, i32) {
    %c0_i32 = arith.constant 0 : i32
    %c0_i32_0 = arith.constant 0 : i32
    %c0_i32_1 = arith.constant 0 : i32
    return %c0_i32, %c0_i32_0 : i32, i32
  }
  func.func @transform_3(%arg0: i32, %arg1: i32, %arg2: i32) -> (i32, i32, i32) {
    %c0_i32 = arith.constant 0 : i32
    %c0_i32_0 = arith.constant 0 : i32
    return %arg0, %c0_i32, %arg1 : i32, i32, i32
  }
}

</mosaic_0001>

<bundles_post_ra>
// kernel: tpu_custom_call.1
= control target key start
LH: loop header
LB: loop body
LE: loop exit
PB: predicated region body
PF: predicated region fallthrough
CT: control target
= control target key end

     0   :  { %8 = vsyncpa [#allocation3], 0  ;;  %s701_s0 = inlined_call_operand.vmem [shape: f32[2,4,256], index: 0, kind: input, shape index: {}]   ;;  %s702_s1 = inlined_call_operand.vmem [shape: f32[8,4], index: 1, kind: input, shape index: {}]   ;;  %s703_s2 = inlined_call_operand.vmem [shape: f32[8,1], index: 2, kind: input, shape index: {}]   ;;  %s704_s3 = inlined_call_operand.hbm [shape: f32[2,8,256], index: 3, kind: output, shape index: {}]  }
   0x1   :  { %10 = vsyncpa [#allocation3 + $0x1], 0  ;;  %s598_s12 = smov 0   ;;  %s600_s13 = smov 0  }
   0x2   :  { %s602_s14 = smov 0   ;;  %s604_s15 = smov 0  }
   0x3   :  { %s606_s16 = smov 0   ;;  %s608_s17 = smov 0  }
   0x4 LB: > { %s420_s18 = sadd.s32 4294967295, %s575_s17   ;;  %s421_s19 = sadd.s32 4294967294, %s575_s17   ;;  %s575_s17 = sphi %s608_s17, %s16_s17   ;;  %s571_s16 = sphi %s606_s16, %s711_s16   ;;  %s567_s15 = sphi %s604_s15, %s710_s15   ;;  %s563_s14 = sphi %s602_s14, %s709_s14   ;;  %s559_s13 = sphi %s600_s13, %s708_s13   ;;  %s555_s12 = sphi %s598_s12, %s707_s12  }
   0x5   : > { %s35_s20 = sadd.s32 1, %s571_s16  ;;  %s121_s21 = sadd.s32 1, %s563_s14 }
   0x6   : > { %p37_p0 = scmp.ge.s32.totalorder %s35_s20, 2  ;;  %p131_p1 = scmp.ne.s32.totalorder %s563_s14, %s559_s13 }
   0x7   : > { %p132_p2 = scmp.eq.s32.totalorder %s420_s18, 1  ;;  %p137_p3 = scmp.ne.s32.totalorder %s559_s13, %s555_s12 }
   0x8   : > { %s713_s20 = smov (%p37_p0, %s35_s20), 0  ;;  %p138_p5 = scmp.eq.s32.totalorder %s421_s19, 1 }
   0x9   : > { %p638_p4 = por %p132_p2, %p131_p1  ;;  %s116_s23 = ssub.s32 %s571_s16, %s713_s20 }
   0xa   : > { %p425_p6 = scmp.ge.s32.totalorder %s575_s17, 1  ;;  %p119_p7 = scmp.eq.s32.totalorder %s116_s23, 0 }
   0xb   : > { %p645_p8 = por %p138_p5, %p137_p3  ;;  %p183_p9 = scmp.lt.s32.totalorder %s575_s17, 3 }
   0xc   : > { %s651_s25 = scalar_select %p119_p7, %s563_s14, %s121_s21  }
   0xd   : > { %p184_p10 = pnand %p425_p6, %p183_p9 }
   0xe   : > { %p220_p11 = scmp.lt.s32.totalorder (!%p184_p10), %s567_s15, 1  ;;  %s216_s8 = sand.u32 (!%p184_p10), 1, %s559_s13  }
   0xf   : > { %187 = sbr.rel (%p184_p10) target bundleno = 166 (0xa6), region = 32  ;;  %s426_s9 = sshll.u32 (!%p184_p10), %s216_s8, 4 }
  0x10   : > { %s439_s10 = sshll.u32 (!%p184_p10), %s567_s15, 4  ;;  %s218_s21 = scalar_lea.vmem (!%p184_p10), [#allocation2], %s426_s9 }
  0x11   : > { %s315_s19 = scalar_lea.hbm (!%p184_p10), %s704_s3, %s439_s10  ;;  %s317_s23 = sshll.u32 (!%p184_p10), %s218_s21, 4  ;;  %s318_s23 = int_to_ptr.vmem [resolvable:$true] %s317_s23 }
  0x12   : > { %s319_s26 = sshll.u32 (!%p184_p10), %s315_s19, 4  ;;  %s302_s27 = scalar_lea.sflag (!%p184_p10), [#allocation3], %s216_s8  ;;  %s320_s26 = int_to_ptr.hbm [resolvable:$true] %s319_s26 }
  0x13   : > { %s517_s4 = scalar_lea.hbm (!%p184_p10), %s704_s3, 32 }
  0x14   : > { %v240_v0 = vld [vmem:[%s703_s2] sm:$0xff]  ;;  %v577_v1 = vmov 0   ;;  %s221_s28 = scalar_select %p220_p11, %s567_s15, 1  ;;  %vm254_vm0 = vcmask 1043456   ;;  %vm250_vm1 = vcmask 31744  }
  0x15   : > { %496 = vset.pattern.permute.xlu0 %v577_v1  ;;  %v239_v3 = vld [vmem:[%s702_s1] sm:$0xff] }
  0x16   : > { %243 = vperm.xlu0 %496, %v240_v0   ;;  %s438_s29 = sshll.u32 %s221_s28, 3  ;;  %s511_s28 = sshra.s32 %s320_s26, 4  ;;  %s512_s28 = int_to_ptr.hbm [resolvable:$true] %s511_s28 }
  0x17   : > { %s231_s5 = scalar_lea.vmem %s701_s0, %s438_s29  ;;  %s513_s15 = scalar_lea.hbm %s512_s28, 16 }
  0x18   : > { %v238_v2 = vld [vmem:[%s231_s5] sm:$0xff]  ;;  %p514_p12 = scmp.ne.s32.totalorder %s512_s28, %s513_s15  ;;  %p518_p1 = scmp.lt.s32.totalorder %s512_s28, %s704_s3 }
  0x19   : > { %247 = vst [vmem:[#allocation1] ss:$2 sm:$0xff] %v238_v2  ;;  %p519_p2 = scmp.lt.s32.totalorder %s517_s4, %s513_s15 }
  0x1a   : > { %p515_p13 = pnand %p514_p12, %p638_p4 }
  0x1b   : > { %p520_p3 = por %p519_p2, %p518_p1 }
  0x1c   : > { %p516_p0 = pneg %p515_p13 }
  0x1e   : > { %p521_p5 = pnand %p520_p3, %p516_p0 }
  0x20   : > { %v248_v4 = vld.sshfl [vmem:[#allocation1] sm:$0xff pattern:$0x75316420]  ;;  %v249_v5 = vld.sshfl [vmem:[#allocation1 + $0x8] sm:$0xff pattern:$0x75316420] }
  0x21   : > { %429 = vmatpush.msk.msra.mxu0 %vm254_vm0, %v248_v4  ;;  %431 = vmatpush.msk.msra.mxu1 %vm254_vm0, %v249_v5 }
  0x22   : > { %430 = vmatmul.msk.f32.vlgmr.msra.gmra.mxu0 %vm250_vm1, %v239_v3  ;;  %432 = vmatmul.msk.f32.vlgmr.msra.gmra.mxu1 %vm250_vm1, %v239_v3 }
  0x88   : > { %v244_v6 = vpop.permute.xlu0 %243 }
  0x9f   : > { %v276_v7 = vpop.f32.mrf.mxu0  ;;  %v296_v8 = vpop.f32.mrf.mxu1 }
  0xa0   : > { %v277_v9 = vadd.f32 %v276_v7, %v244_v6  ;;  %v297_v10 = vadd.f32 %v296_v8, %v244_v6 }
  0xa2   : > { %299 = vst [vmem:[%s218_s21] sm:$0xff] %v277_v9 }
  0xa3   : > { %300 = vst [vmem:[%s218_s21 + $0x8] sm:$0xff] %v297_v10 }
  0xa4   : > { %524 = shalt.err (!%p521_p5)
}
  0xa5   : > { %440 = dma.vmem_to_hbm [thread:$0]  (%p638_p4), %s318_s23, 256, %s320_s26, %s302_s27  }
  0xa6 PF: > { %p446_p6 = scmp.ge.s32.totalorder %s575_s17, 2  ;;  %s331_s7 = sand.u32 1, %s555_s12  }
  0xa7   : > { %s332_s8 = scalar_lea.sflag [#allocation3], %s331_s7 }
  0xa8   : > { %p443_p7 = pnand %p446_p6, %p645_p8 }
  0xaa   : > { %p444_p9 = pneg %p443_p7 }
  0xac   : > { %550 = dma.done.wait (%p444_p9), %s332_s8, 256  }
  0xad   : > { %552 = vsyncadd (%p444_p9), %s332_s8, 4294967040  ;;  %s16_s17 = sadd.s32 1, %s575_s17   ;;  %s707_s12 = smov %s559_s13 }
  0xae   : > { %p13_p10 = scmp.ge.s32.totalorder %s16_s17, 4   ;;  %s708_s13 = smov %s563_s14 }
  0xaf   : > { %s709_s14 = smov %s651_s25  ;;  %s710_s15 = smov %s571_s16 }
  0xb0   : > { %s711_s16 = smov %s713_s20  ;;  %15 = sbr.rel (!%p13_p10) target bundleno = 4 (0x4), region = 70 }
  0xb5   :  { %338 = vsyncpa [#allocation3], 1 }
  0xb6   :  { %340 = vsyncpa [#allocation3 + $0x1], 1 }

</bundles_post_ra>
